<compile_context>
chip_gen: v7x
topology: tpu7x:2x2x1
jax: 0.10.0
libtpu: 0.0.40
codegen_flags: <defaults>
</compile_context>

<pallas_src>
import functools

import jax
import jax.numpy as jnp
from jax.experimental import pallas as pl
from jax.experimental.pallas import tpu as pltpu

LANE = 128          # lane width: padded hidden / output feature width
BF16_SUBLANE = 16   # bf16 sublane tile height (row-alignment unit for packed weights)
F32_SUBLANE = 8     # f32 sublane tile height (bias block rows)


def _round_up(x, m):
    return (x + m - 1) // m * m


def _choose_block_b(batch, min_block=128, max_block=2048):
    """Largest power-of-two batch tile in [min_block, max_block] that still leaves
    >= 4 grid steps (so v7x's 2 TensorCores each get >= 2 tiles), falling back to
    >= 2 steps, else min_block.  Big tiles amortize the ~0.35us per-grid-step
    pipeline overhead (128-row tiles ~29% of HBM roofline vs ~85% at 512+)."""
    for min_steps in (4, 2):
        b = max_block
        while b >= min_block:
            if pl.cdiv(batch, b) >= min_steps:
                return b
            b //= 2
    return min_block


# ---------------------------------------------------------------------------
# Pallas kernel: one batch tile of the full 3-layer MLP
# ---------------------------------------------------------------------------
def _mlp_actor_kernel(x_ref, w_ref, b_ref, o_ref, *, act_limit, obs_pad, act_dim):
    """x_ref: (TB, obs_pad) f32 batch tile.
    w_ref: (obs_pad + 2*LANE, LANE) bf16 packed [W1 | W2 | W3].
    b_ref: (8, LANE) f32, rows 0..2 = b1, b2, b3 (lane-padded with zeros).
    o_ref: (TB, act_dim) f32 narrow output."""
    r1 = obs_pad          # end of W1 rows
    r2 = r1 + LANE        # end of W2 rows
    r3 = r2 + LANE        # end of W3 rows

    w1 = w_ref[0:r1, :]                                   # (obs_pad, LANE) bf16
    w2 = w_ref[r1:r2, :]                                  # (LANE, LANE)   bf16
    w3 = w_ref[r2:r3, :]                                  # (LANE, LANE)   bf16
    b1 = b_ref[0:1, :]                                    # (1, LANE) f32
    b2 = b_ref[1:2, :]
    b3 = b_ref[2:3, :]

    x = x_ref[...].astype(jnp.bfloat16)                   # bf16 operands into the MXU

    # Layer 1: Linear + ReLU (f32 accumulate, f32 elementwise)
    h = jnp.dot(x, w1, preferred_element_type=jnp.float32) + b1
    h = jnp.maximum(h, 0.0)

    # Layer 2: Linear + ReLU
    h = jnp.dot(h.astype(jnp.bfloat16), w2, preferred_element_type=jnp.float32) + b2
    h = jnp.maximum(h, 0.0)

    # Layer 3: Linear + Tanh, scaled by act_limit (EUP tanh + VPU mul), narrow store
    z = jnp.dot(h.astype(jnp.bfloat16), w3, preferred_element_type=jnp.float32) + b3
    o_ref[...] = (act_limit * jnp.tanh(z[:, :act_dim])).astype(o_ref.dtype)


# ---------------------------------------------------------------------------
# Parameter packing: bf16 weight slab [W1 | W2 | W3] + f32 bias block
# ---------------------------------------------------------------------------
def pack_params(params, obs_dim, hidden_sizes, act_dim):
    h1, h2 = hidden_sizes
    assert h1 <= LANE and h2 <= LANE and act_dim <= LANE, (
        "packing layout requires hidden sizes and act_dim <= 128")
    obs_pad = _round_up(obs_dim, BF16_SUBLANE)
    rows = obs_pad + 2 * LANE
    r1 = obs_pad
    r2 = r1 + LANE

    packed_w = jnp.zeros((rows, LANE), jnp.bfloat16)
    packed_w = packed_w.at[:obs_dim, :h1].set(params["w1"].astype(jnp.bfloat16))
    packed_w = packed_w.at[r1:r1 + h1, :h2].set(params["w2"].astype(jnp.bfloat16))
    packed_w = packed_w.at[r2:r2 + h2, :act_dim].set(params["w3"].astype(jnp.bfloat16))

    biases = jnp.zeros((F32_SUBLANE, LANE), jnp.float32)
    biases = biases.at[0, :h1].set(params["b1"].reshape(-1).astype(jnp.float32))
    biases = biases.at[1, :h2].set(params["b2"].reshape(-1).astype(jnp.float32))
    biases = biases.at[2, :act_dim].set(params["b3"].reshape(-1).astype(jnp.float32))
    return packed_w, biases


# ---------------------------------------------------------------------------
# Wrapper: 1-D batch grid, params VMEM-resident, narrow output
# ---------------------------------------------------------------------------
@functools.partial(jax.jit, static_argnames=("obs_dim", "act_dim", "act_limit", "block_b"))
def mlp_actor_forward(obs, packed_w, biases, *, obs_dim, act_dim, act_limit, block_b=None):
    B = obs.shape[0]
    obs_pad = packed_w.shape[0] - 2 * LANE
    if block_b is None:
        block_b = _choose_block_b(B)
    B_pad = _round_up(B, block_b)

    x = obs
    pad_rows = B_pad - B
    pad_cols = obs_pad - obs_dim
    if pad_rows or pad_cols:
        # Only the ragged batch tail / feature remainder is padded; no full
        # zeros-alloc + set pass over obs.  (No-op for aligned shapes.)
        x = jnp.pad(x, ((0, pad_rows), (0, pad_cols)))

    kernel = functools.partial(_mlp_actor_kernel, act_limit=float(act_limit),
                               obs_pad=obs_pad, act_dim=act_dim)

    out = pl.pallas_call(
        kernel,
        out_shape=jax.ShapeDtypeStruct((B_pad, act_dim), jnp.float32),
        grid_spec=pltpu.PrefetchScalarGridSpec(
            num_scalar_prefetch=0,
            grid=(B_pad // block_b,),
            in_specs=[
                # obs tile walks the batch; weight/bias blocks have constant
                # index_maps so Pallas keeps them VMEM-resident across steps.
                pl.BlockSpec((block_b, obs_pad), lambda i: (i, 0)),
                pl.BlockSpec(packed_w.shape, lambda i: (0, 0)),
                pl.BlockSpec(biases.shape, lambda i: (0, 0)),
            ],
            out_specs=pl.BlockSpec((block_b, act_dim), lambda i: (i, 0)),
        ),
        compiler_params=pltpu.CompilerParams(
            dimension_semantics=("parallel",),   # v7x splits batch tiles across its 2 TCs
        ),
    )(x, packed_w, biases)

    if pad_rows:
        out = out[:B]
    return out


# ---------------------------------------------------------------------------
# Deterministic init (kaiming-uniform weights, zero biases) + pure-JAX reference
# ---------------------------------------------------------------------------
def init_params(key, obs_dim, hidden_sizes, act_dim):
    sizes = [obs_dim] + list(hidden_sizes) + [act_dim]
    params = {}
    for j in range(len(sizes) - 1):
        fan_in, fan_out = sizes[j], sizes[j + 1]
        key, wk = jax.random.split(key)
        bound = jnp.sqrt(6.0 / fan_in)  # kaiming_uniform_ bound
        params[f"w{j + 1}"] = jax.random.uniform(
            wk, (fan_in, fan_out), jnp.float32, -bound, bound)
        params[f"b{j + 1}"] = jnp.zeros((fan_out,), jnp.float32)
    return params


def reference_forward(obs, params, act_limit):
    """Mirrors the kernel math: bf16 matmul operands, f32 accumulate, f32 biases."""
    def dense(x, w, b):
        return jnp.dot(x.astype(jnp.bfloat16), w.astype(jnp.bfloat16),
                       preferred_element_type=jnp.float32) + b.astype(jnp.float32)

    h = jnp.maximum(dense(obs, params["w1"], params["b1"]), 0.0)
    h = jnp.maximum(dense(h, params["w2"], params["b2"]), 0.0)
    return act_limit * jnp.tanh(dense(h, params["w3"], params["b3"]))


if __name__ == "__main__":
    # obs_dim=16, hidden=(32, 32), act_dim=8; batch=256 -> two 128-row tiles.
    batch, obs_dim, act_dim = 256, 16, 8
    hidden_sizes = (32, 32)
    act_limit = 2.0

    key = jax.random.PRNGKey(0)
    key, ok = jax.random.split(key)
    obs = jax.random.normal(ok, (batch, obs_dim), jnp.float32)
    params = init_params(key, obs_dim, hidden_sizes, act_dim)

    packed_w, biases = pack_params(params, obs_dim, hidden_sizes, act_dim)
    out = mlp_actor_forward(obs, packed_w, biases, obs_dim=obs_dim, act_dim=act_dim,
                            act_limit=act_limit)
    out = jax.block_until_ready(out)

    ref = reference_forward(obs, params, act_limit)
    assert out.shape == (batch, act_dim), out.shape
    max_err = jnp.max(jnp.abs(out - ref))
    assert jnp.allclose(out, ref, atol=1e-2, rtol=1e-2), max_err

    print("KERNEL_OK")
</pallas_src>

<mosaic_0001>
module attributes {stable_mosaic.version = 11 : i64} {
  func.func @_mlp_actor_kernel(%arg0: i32, %arg1: memref<128x16xf32, #tpu.memory_space<vmem>>, %arg2: memref<272x128xbf16, #tpu.memory_space<vmem>>, %arg3: memref<8x128xf32, #tpu.memory_space<vmem>>, %arg4: memref<128x8xf32, #tpu.memory_space<vmem>>) attributes {dimension_semantics = [#tpu.dimension_semantics<parallel>], iteration_bounds = array<i64: 2>, scalar_prefetch = 0 : i64, scratch_operands = 0 : i64, tpu.core_type = #tpu.core_type<tc>, window_params = [{transform_indices = @transform_0, window_bounds = array<i64: 128, 16>}, {pipeline_mode = #tpu.pipeline_mode<synchronous>, transform_indices = @transform_1, window_bounds = array<i64: 272, 128>}, {pipeline_mode = #tpu.pipeline_mode<synchronous>, transform_indices = @transform_2, window_bounds = array<i64: 8, 128>}, {transform_indices = @transform_3, window_bounds = array<i64: 128, 8>}]} {
    %c0 = arith.constant 0 : index
    %c0_0 = arith.constant 0 : index
    %0 = vector.load %arg2[%c0, %c0_0] : memref<272x128xbf16, #tpu.memory_space<vmem>>, vector<16x128xbf16>
    %c16 = arith.constant 16 : index
    %c0_1 = arith.constant 0 : index
    %1 = vector.load %arg2[%c16, %c0_1] : memref<272x128xbf16, #tpu.memory_space<vmem>>, vector<128x128xbf16>
    %c144 = arith.constant 144 : index
    %c0_2 = arith.constant 0 : index
    %2 = vector.load %arg2[%c144, %c0_2] : memref<272x128xbf16, #tpu.memory_space<vmem>>, vector<128x128xbf16>
    %c0_3 = arith.constant 0 : index
    %c0_4 = arith.constant 0 : index
    %3 = vector.load %arg3[%c0_3, %c0_4] : memref<8x128xf32, #tpu.memory_space<vmem>>, vector<1x128xf32>
    %c1 = arith.constant 1 : index
    %c0_5 = arith.constant 0 : index
    %4 = vector.load %arg3[%c1, %c0_5] : memref<8x128xf32, #tpu.memory_space<vmem>>, vector<1x128xf32>
    %c2 = arith.constant 2 : index
    %c0_6 = arith.constant 0 : index
    %5 = vector.load %arg3[%c2, %c0_6] : memref<8x128xf32, #tpu.memory_space<vmem>>, vector<1x128xf32>
    %c0_7 = arith.constant 0 : index
    %c0_8 = arith.constant 0 : index
    %6 = vector.load %arg1[%c0_7, %c0_8] : memref<128x16xf32, #tpu.memory_space<vmem>>, vector<128x16xf32>
    %7 = arith.truncf %6 : vector<128x16xf32> to vector<128x16xbf16>
    %cst = arith.constant dense<0.000000e+00> : vector<128x128xf32>
    %8 = tpu.matmul %7, %0, %cst {dimension_numbers = #tpu.dot_dimension_numbers<[1], [0], [0], [1], [0, 0, 1, 1], [], []>} : vector<128x16xbf16>, vector<16x128xbf16>, vector<128x128xf32> -> vector<128x128xf32>
    %9 = vector.broadcast %3 : vector<1x128xf32> to vector<128x128xf32>
    %10 = arith.addf %8, %9 : vector<128x128xf32>
    %cst_9 = arith.constant 0.000000e+00 : f32
    %11 = vector.broadcast %cst_9 : f32 to vector<128x128xf32>
    %12 = arith.maximumf %10, %11 : vector<128x128xf32>
    %13 = arith.truncf %12 : vector<128x128xf32> to vector<128x128xbf16>
    %cst_10 = arith.constant dense<0.000000e+00> : vector<128x128xf32>
    %14 = tpu.matmul %13, %1, %cst_10 {dimension_numbers = #tpu.dot_dimension_numbers<[1], [0], [0], [1], [0, 0, 1, 1], [], []>} : vector<128x128xbf16>, vector<128x128xbf16>, vector<128x128xf32> -> vector<128x128xf32>
    %15 = vector.broadcast %4 : vector<1x128xf32> to vector<128x128xf32>
    %16 = arith.addf %14, %15 : vector<128x128xf32>
    %cst_11 = arith.constant 0.000000e+00 : f32
    %17 = vector.broadcast %cst_11 : f32 to vector<128x128xf32>
    %18 = arith.maximumf %16, %17 : vector<128x128xf32>
    %19 = arith.truncf %18 : vector<128x128xf32> to vector<128x128xbf16>
    %cst_12 = arith.constant dense<0.000000e+00> : vector<128x128xf32>
    %20 = tpu.matmul %19, %2, %cst_12 {dimension_numbers = #tpu.dot_dimension_numbers<[1], [0], [0], [1], [0, 0, 1, 1], [], []>} : vector<128x128xbf16>, vector<128x128xbf16>, vector<128x128xf32> -> vector<128x128xf32>
    %21 = vector.broadcast %5 : vector<1x128xf32> to vector<128x128xf32>
    %22 = arith.addf %20, %21 : vector<128x128xf32>
    %23 = vector.extract_strided_slice %22 {offsets = [0, 0], sizes = [128, 8], strides = [1, 1]} : vector<128x128xf32> to vector<128x8xf32>
    %24 = math.tanh %23 : vector<128x8xf32>
    %cst_13 = arith.constant 2.000000e+00 : f32
    %25 = vector.broadcast %cst_13 : f32 to vector<128x8xf32>
    %26 = arith.mulf %25, %24 : vector<128x8xf32>
    %c0_14 = arith.constant 0 : index
    %c0_15 = arith.constant 0 : index
    %27 = vector.load %arg4[%c0_14, %c0_15] : memref<128x8xf32, #tpu.memory_space<vmem>>, vector<128x8xf32>
    tpu.vector_store %arg4[%c0_14, %c0_15], %26 {strides = array<i32>} : memref<128x8xf32, #tpu.memory_space<vmem>>, vector<128x8xf32>,
    return
  }
  func.func @transform_0(%arg0: i32) -> (i32, i32) {
    %c0_i32 = arith.constant 0 : i32
    %c0_i32_0 = arith.constant 0 : i32
    return %arg0, %c0_i32 : i32, i32
  }
  func.func @transform_1(%arg0: i32) -> (i32, i32) {
    %c0_i32 = arith.constant 0 : i32
    %c0_i32_0 = arith.constant 0 : i32
    %c0_i32_1 = arith.constant 0 : i32
    return %c0_i32, %c0_i32_0 : i32, i32
  }
  func.func @transform_2(%arg0: i32) -> (i32, i32) {
    %c0_i32 = arith.constant 0 : i32
    %c0_i32_0 = arith.constant 0 : i32
    %c0_i32_1 = arith.constant 0 : i32
    return %c0_i32, %c0_i32_0 : i32, i32
  }
  func.func @transform_3(%arg0: i32) -> (i32, i32) {
    %c0_i32 = arith.constant 0 : i32
    %c0_i32_0 = arith.constant 0 : i32
    return %arg0, %c0_i32 : i32, i32
  }
}

</mosaic_0001>

<bundles_post_ra>
// kernel: mlp_actor_forward.1
= control target key start
LH: loop header
LB: loop body
LE: loop exit
PB: predicated region body
PF: predicated region fallthrough
CT: control target
= control target key end

     0   :  { %s1066_s12 = smov 0   ;;  %s1228_s0 = inlined_call_operand.vmem [shape: f32[256,16], index: 0, kind: input, shape index: {}]   ;;  %s1229_s1 = inlined_call_operand.vmem [shape: bf16[272,128], index: 1, kind: input, shape index: {}]   ;;  %s1230_s2 = inlined_call_operand.vmem [shape: f32[8,128], index: 2, kind: input, shape index: {}]   ;;  %s1231_s3 = inlined_call_operand.vmem [shape: f32[256,8], index: 3, kind: output, shape index: {}]  }
   0x1 LB: > { %s819_s13 = sadd.s32 4294967295, %s1044_s12   ;;  %p823_p0 = scmp.ge.s32.totalorder %s1044_s12, 1  ;;  %s1044_s12 = sphi %s1066_s12, %s13_s12  }
   0x2   : > { %p138_p1 = scmp.lt.s32.totalorder %s1044_s12, 3 }
   0x4   : > { %p139_p2 = pnand %p823_p0, %p138_p1 }
   0x5   : > { %v989_v0 = vld [vmem:[%s1229_s1] sm:$0xff] (!%p139_p2)   ;;  %s824_s16 = sshll.u32 (!%p139_p2), %s819_s13, 4  ;;  %v990_v1 = vld [vmem:[%s1229_s1 + $0x8] sm:$0xff] (!%p139_p2)   ;;  %v991_v2 = vld [vmem:[%s1229_s1 + $0x10] sm:$0xff] (!%p139_p2)   ;;  %vm246_vm0 = vcmask (!%p139_p2), 130048   ;;  %vm746_vm1 = vcmask (!%p139_p2), 64512  }
   0x6   : > { %142 = sbr.rel (%p139_p2) target bundleno = 719 (0x2cf), region = 32  ;;  %p163_p3 = scmp.lt.s32.totalorder (!%p139_p2), %s824_s16, 31  ;;  %899 = vmatprep.subr.bf16.mxu0 (!%p139_p2), %v989_v0  ;;  %917 = vmatprep.subr.bf16.mxu1 (!%p139_p2), %v990_v1  ;;  %v992_v3 = vld [vmem:[%s1229_s1 + $0x18] sm:$0xff] (!%p139_p2)   ;;  %v993_v13 = vld [vmem:[%s1229_s1 + $0x20] sm:$0xff] (!%p139_p2)   ;;  %v994_v18 = vld [vmem:[%s1229_s1 + $0x28] sm:$0xff] (!%p139_p2)  }
   0x7   : > { %900 = vmatpush3.bf16.msra.mxu0 (!%p139_p2), %v989_v0  ;;  %918 = vmatpush3.bf16.msra.mxu1 (!%p139_p2), %v990_v1  ;;  %v995_v21 = vld [vmem:[%s1229_s1 + $0x30] sm:$0xff] (!%p139_p2)   ;;  %v996_v31 = vld [vmem:[%s1229_s1 + $0x38] sm:$0xff] (!%p139_p2)   ;;  %v997_v32 = vld [vmem:[%s1229_s1 + $0x40] sm:$0xff] (!%p139_p2)  }
   0x8   : > { %919 = vmatprep.subr.bf16.mxu1 (!%p139_p2), %v991_v2  ;;  %v998_v33 = vld [vmem:[%s1229_s1 + $0x48] sm:$0xff] (!%p139_p2)   ;;  %v999_v34 = vld [vmem:[%s1229_s1 + $0x50] sm:$0xff] (!%p139_p2)   ;;  %v1000_v35 = vld [vmem:[%s1229_s1 + $0x58] sm:$0xff] (!%p139_p2)  }
   0x9   : > { %949 = vmatprep.subr.bf16.mxu0 (!%p139_p2), %v998_v33  ;;  %v1001_v36 = vld [vmem:[%s1229_s1 + $0x60] sm:$0xff] (!%p139_p2)   ;;  %v1002_v37 = vld [vmem:[%s1229_s1 + $0x68] sm:$0xff] (!%p139_p2)   ;;  %v1003_v38 = vld [vmem:[%s1229_s1 + $0x70] sm:$0xff] (!%p139_p2)  }
   0xa   : > { %v828_v39 = vld [vmem:[%s1230_s2] ss:$0 sm:$0xff] (!%p139_p2) }
   0xb   : > { %920 = vmatpush3.bf16.msra.mxu1 (!%p139_p2), %v991_v2 }
   0xc   : > { %921 = vmatprep.subr.bf16.mxu1 (!%p139_p2), %v992_v3 }
   0xd   : > { %s1233_s16 = smov (!%p163_p3, %s824_s16), 31 }
   0xe   : > { %s825_s21 = sshll.u32 %s1233_s16, 3 }
   0xf   : > { %s1091_s24 = scalar_lea.vmem %s1228_s0, %s825_s21  ;;  %922 = vmatpush3.bf16.msra.mxu1 %v992_v3  ;;  %s1183_s10 = scalar_lea.vmem %s1231_s3, %s825_s21 }
  0x10   : > { %v212_v4 = vld [vmem:[%s1091_s24] sm:$0xff]  ;;  %v213_v5 = vld [vmem:[%s1091_s24 + $0x8] sm:$0xff]  ;;  %v214_v6 = vld [vmem:[%s1091_s24 + $0x10] sm:$0xff]  ;;  %923 = vmatprep.subr.bf16.mxu1 %v993_v13 }
  0x11   : > { %v228_v7 = vpack.c.bf16 %v213_v5, %v212_v4  ;;  %v215_v8 = vld [vmem:[%s1091_s24 + $0x18] sm:$0xff]  ;;  %v216_v9 = vld [vmem:[%s1091_s24 + $0x20] sm:$0xff]  ;;  %v217_v10 = vld [vmem:[%s1091_s24 + $0x28] sm:$0xff] }
  0x12   : > { %v229_v11 = vpack.c.bf16 %v215_v8, %v214_v6  ;;  %v230_v12 = vpack.c.bf16 %v217_v10, %v216_v9  ;;  %v218_v14 = vld [vmem:[%s1091_s24 + $0x30] sm:$0xff]  ;;  %v219_v15 = vld [vmem:[%s1091_s24 + $0x38] sm:$0xff]  ;;  %v220_v16 = vld [vmem:[%s1091_s24 + $0x40] sm:$0xff] }
  0x13   : > { %901 = vmatprep.mubr.msk.bf16.mxu0 %vm246_vm0, %v228_v7  ;;  %v221_v17 = vld [vmem:[%s1091_s24 + $0x48] sm:$0xff]  ;;  %v231_v19 = vpack.c.bf16 %v219_v15, %v218_v14  ;;  %924 = vmatpush3.bf16.msra.mxu1 %v993_v13  ;;  %v222_v22 = vld [vmem:[%s1091_s24 + $0x50] sm:$0xff]  ;;  %v223_v23 = vld [vmem:[%s1091_s24 + $0x58] sm:$0xff] }
  0x14   : > { %902 = vmatmul.mubr.msk.bf16.vlgmr.msra.gmra.mrb[0].mxu0 %vm246_vm0, %v229_v11  ;;  %v232_v20 = vpack.c.bf16 %v221_v17, %v220_v16  ;;  %925 = vmatprep.subr.bf16.mxu1 %v994_v18  ;;  %v224_v24 = vld [vmem:[%s1091_s24 + $0x60] sm:$0xff]  ;;  %v225_v25 = vld [vmem:[%s1091_s24 + $0x68] sm:$0xff]  ;;  %v233_v26 = vpack.c.bf16 %v223_v23, %v222_v22  ;;  %v226_v28 = vld [vmem:[%s1091_s24 + $0x70] sm:$0xff] }
  0x15   : > { %905 = vmatprep.mubr.msk.bf16.mxu0 %vm246_vm0, %v230_v12  ;;  %v234_v27 = vpack.c.bf16 %v225_v25, %v224_v24  ;;  %v227_v29 = vld [vmem:[%s1091_s24 + $0x78] sm:$0xff]  ;;  %950 = vmatpush3.bf16.msra.mxu0 %v998_v33  ;;  %v1005_v33 = vld [vmem:[%s1229_s1 + $0x80] sm:$0xff]  }
  0x16   : > { %v235_v30 = vpack.c.bf16 %v227_v29, %v226_v28  ;;  %951 = vmatprep.subr.bf16.mxu0 %v999_v34 }
  0x17   : > { %926 = vmatpush3.bf16.msra.mxu1 %v994_v18 }
  0x18   : > { %927 = vmatprep.subr.bf16.mxu1 %v995_v21 }
  0x19   : > { %952 = vmatpush3.bf16.msra.mxu0 %v999_v34  ;;  %v838_v34 = vld [vmem:[%s1230_s2 + $0x1] ss:$0 sm:$0xff] }
  0x1a   : > { %953 = vmatprep.subr.bf16.mxu0 %v1000_v35 }
  0x1b   : > { %928 = vmatpush3.bf16.msra.mxu1 %v995_v21 }
  0x1c   : > { %906 = vmatmul.mubr.msk.bf16.gmra.mrb[4].mxu0 %vm246_vm0, %v231_v19  ;;  %929 = vmatprep.subr.bf16.mxu1 %v996_v31 }
  0x1d   : > { %909 = vmatprep.mubr.msk.bf16.mxu0 %vm246_vm0, %v232_v20  ;;  %954 = vmatpush3.bf16.msra.mxu0 %v1000_v35 }
  0x1e   : > { %955 = vmatprep.subr.bf16.mxu0 %v1001_v36 }
  0x1f   : > { %930 = vmatpush3.bf16.msra.mxu1 %v996_v31 }
  0x20   : > { %931 = vmatprep.subr.bf16.mxu1 %v997_v32 }
  0x21   : > { %956 = vmatpush3.bf16.msra.mxu0 %v1001_v36 }
  0x22   : > { %957 = vmatprep.subr.bf16.mxu0 %v1002_v37 }
  0x23   : > { %932 = vmatpush3.bf16.msra.mxu1 %v997_v32  ;;  %v1004_v32 = vld [vmem:[%s1229_s1 + $0x78] sm:$0xff]  }
  0x24   : > { %910 = vmatmul.mubr.msk.bf16.gmra.mrb[8].mxu0 %vm246_vm0, %v233_v26 }
  0x25   : > { %913 = vmatprep.mubr.msk.bf16.mxu0 %vm246_vm0, %v234_v27  ;;  %958 = vmatpush3.bf16.msra.mxu0 %v1002_v37 }
  0x26   : > { %959 = vmatprep.subr.bf16.mxu0 %v1003_v38 }
  0x29   : > { %960 = vmatpush3.bf16.msra.mxu0 %v1003_v38 }
  0x2a   : > { %961 = vmatprep.subr.bf16.mxu0 %v1004_v32 }
  0x2c   : > { %914 = vmatmul.mubr.msk.bf16.gmra.mrb[12].mxu0 %vm246_vm0, %v235_v30 }
  0x2d   : > { %962 = vmatpush3.bf16.msra.mxu0 %v1004_v32 }
  0x2e   : > { %963 = vmatprep.subr.bf16.mxu0 %v1005_v33 }
  0x31   : > { %964 = vmatpush3.bf16.msra.mxu0 %v1005_v33 }
  0xe7   : > { %v903_v40 = vpop.f32.mrb[0].mxu0 }
  0xe8   : > { %v314_v41 = vadd.f32 %v903_v40, %v828_v39  ;;  %v305_v42 = vpop.f32.mrb[1].mxu0 }
  0xe9   : > { %v306_v43 = vadd.f32 %v828_v39, %v305_v42  ;;  %v904_v44 = vpop.f32.mrb[2].mxu0 }
  0xea   : > { %v317_v45 = vadd.f32 %v904_v44, %v828_v39  ;;  %v308_v46 = vpop.f32.mrb[3].mxu0  ;;  %v370_v48 = vmax.f32 %v314_v41, 0.0 }
  0xeb   : > { %v309_v47 = vadd.f32 %v828_v39, %v308_v46  ;;  %v368_v50 = vmax.f32 %v306_v43, 0.0 }
  0xec   : > { %v371_v49 = vmax.f32 %v317_v45, 0.0 }
  0xed   : > { %v369_v51 = vmax.f32 %v309_v47, 0.0 }
  0xee   : > { %v385_v52 = vpack.c.bf16 %v371_v49, %v370_v48 }
  0xef   : > { %v907_v53 = vpop.f32.mrb[4].mxu0  ;;  %v384_v54 = vpack.c.bf16 %v369_v51, %v368_v50 }
  0xf0   : > { %v330_v55 = vadd.f32 %v907_v53, %v828_v39  ;;  %v321_v56 = vpop.f32.mrb[5].mxu0 }
  0xf1   : > { %v322_v57 = vadd.f32 %v828_v39, %v321_v56  ;;  %v908_v58 = vpop.f32.mrb[6].mxu0  ;;  %933 = vmatprep.mubr.bf16.mxu1 %v384_v54 }
  0xf2   : > { %v333_v59 = vadd.f32 %v908_v58, %v828_v39  ;;  %v324_v60 = vpop.f32.mrb[7].mxu0  ;;  %934 = vmatmul.mubr.bf16.vlgmr.msra.gmra.mrb[0].mxu1 %v385_v52  ;;  %v374_v62 = vmax.f32 %v330_v55, 0.0 }
  0xf3   : > { %v325_v61 = vadd.f32 %v828_v39, %v324_v60  ;;  %v372_v0 = vmax.f32 %v322_v57, 0.0 }
  0xf4   : > { %v375_v63 = vmax.f32 %v333_v59, 0.0 }
  0xf5   : > { %v373_v1 = vmax.f32 %v325_v61, 0.0 }
  0xf6   : > { %v387_v2 = vpack.c.bf16 %v375_v63, %v374_v62 }
  0xf7   : > { %v386_v3 = vpack.c.bf16 %v373_v1, %v372_v0  ;;  %v911_v4 = vpop.f32.mrb[8].mxu0 }
  0xf8   : > { %v346_v5 = vadd.f32 %v911_v4, %v828_v39  ;;  %v337_v6 = vpop.f32.mrb[9].mxu0 }
  0xf9   : > { %v338_v7 = vadd.f32 %v828_v39, %v337_v6  ;;  %v912_v8 = vpop.f32.mrb[10].mxu0  ;;  %937 = vmatprep.mubr.bf16.mxu1 %v386_v3 }
  0xfa   : > { %v349_v9 = vadd.f32 %v912_v8, %v828_v39  ;;  %v340_v10 = vpop.f32.mrb[11].mxu0  ;;  %938 = vmatmul.mubr.bf16.gmra.mrb[4].mxu1 %v387_v2  ;;  %v378_v12 = vmax.f32 %v346_v5, 0.0 }
  0xfb   : > { %v341_v11 = vadd.f32 %v828_v39, %v340_v10  ;;  %v376_v14 = vmax.f32 %v338_v7, 0.0 }
  0xfc   : > { %v379_v13 = vmax.f32 %v349_v9, 0.0 }
  0xfd   : > { %v377_v15 = vmax.f32 %v341_v11, 0.0 }
  0xfe   : > { %v389_v16 = vpack.c.bf16 %v379_v13, %v378_v12 }
  0xff   : > { %v388_v17 = vpack.c.bf16 %v377_v15, %v376_v14  ;;  %v915_v18 = vpop.f32.mrb[12].mxu0 }
 0x100   : > { %v362_v19 = vadd.f32 %v915_v18, %v828_v39  ;;  %v353_v20 = vpop.f32.mrb[13].mxu0 }
 0x101   : > { %v354_v21 = vadd.f32 %v828_v39, %v353_v20  ;;  %v916_v22 = vpop.f32.mrb[14].mxu0  ;;  %941 = vmatprep.mubr.bf16.mxu1 %v388_v17 }
 0x102   : > { %v365_v23 = vadd.f32 %v916_v22, %v828_v39  ;;  %v356_v24 = vpop.f32.mrb[15].mxu0  ;;  %942 = vmatmul.mubr.bf16.gmra.mrb[8].mxu1 %v389_v16  ;;  %v382_v26 = vmax.f32 %v362_v19, 0.0 }
 0x103   : > { %v357_v25 = vadd.f32 %v828_v39, %v356_v24  ;;  %v380_v28 = vmax.f32 %v354_v21, 0.0 }
 0x104   : > { %v383_v27 = vmax.f32 %v365_v23, 0.0 }
 0x105   : > { %v381_v29 = vmax.f32 %v357_v25, 0.0 }
 0x106   : > { %v391_v30 = vpack.c.bf16 %v383_v27, %v382_v26  ;;  %v1168_v27 = vld [vmem:[%s1230_s2 + $0x2] ss:$0 sm:$0xff] }
 0x107   : > { %v390_v31 = vpack.c.bf16 %v381_v29, %v380_v28 }
 0x109   : > { %945 = vmatprep.mubr.bf16.mxu1 %v390_v31 }
 0x10a   : > { %946 = vmatmul.mubr.bf16.gmra.mrb[12].mxu1 %v391_v30 }
 0x1c5   : > { %v935_v35 = vpop.f32.mrb[0].mxu1 }
 0x1c6   : > { %v487_v36 = vadd.f32 %v935_v35, %v838_v34  ;;  %v478_v37 = vpop.f32.mrb[1].mxu1 }
 0x1c7   : > { %v479_v38 = vadd.f32 %v838_v34, %v478_v37  ;;  %v936_v39 = vpop.f32.mrb[2].mxu1 }
 0x1c8   : > { %v490_v40 = vadd.f32 %v936_v39, %v838_v34  ;;  %v481_v41 = vpop.f32.mrb[3].mxu1  ;;  %v543_v43 = vmax.f32 %v487_v36, 0.0 }
 0x1c9   : > { %v482_v42 = vadd.f32 %v838_v34, %v481_v41  ;;  %v541_v45 = vmax.f32 %v479_v38, 0.0 }
 0x1ca   : > { %v544_v44 = vmax.f32 %v490_v40, 0.0 }
 0x1cb   : > { %v542_v46 = vmax.f32 %v482_v42, 0.0 }
 0x1cc   : > { %v558_v47 = vpack.c.bf16 %v544_v44, %v543_v43 }
 0x1cd   : > { %v557_v48 = vpack.c.bf16 %v542_v46, %v541_v45  ;;  %v939_v49 = vpop.f32.mrb[4].mxu1 }
 0x1ce   : > { %v503_v50 = vadd.f32 %v939_v49, %v838_v34  ;;  %v494_v51 = vpop.f32.mrb[5].mxu1 }
 0x1cf   : > { %v495_v52 = vadd.f32 %v838_v34, %v494_v51  ;;  %v940_v53 = vpop.f32.mrb[6].mxu1  ;;  %965 = vmatprep.mubr.bf16.mxu0 %v557_v48 }
 0x1d0   : > { %v506_v54 = vadd.f32 %v940_v53, %v838_v34  ;;  %v497_v55 = vpop.f32.mrb[7].mxu1  ;;  %966 = vmatmul.mubr.bf16.vlgmr.msra.gmra.mrb[16].mxu0 %v558_v47  ;;  %v547_v57 = vmax.f32 %v503_v50, 0.0 }
 0x1d1   : > { %v498_v56 = vadd.f32 %v838_v34, %v497_v55  ;;  %v545_v59 = vmax.f32 %v495_v52, 0.0 }
 0x1d2   : > { %v548_v58 = vmax.f32 %v506_v54, 0.0 }
 0x1d3   : > { %v546_v60 = vmax.f32 %v498_v56, 0.0 }
 0x1d4   : > { %v560_v61 = vpack.c.bf16 %v548_v58, %v547_v57 }
 0x1d5   : > { %v559_v62 = vpack.c.bf16 %v546_v60, %v545_v59  ;;  %v943_v63 = vpop.f32.mrb[8].mxu1 }
 0x1d6   : > { %v519_v0 = vadd.f32 %v943_v63, %v838_v34  ;;  %v510_v1 = vpop.f32.mrb[9].mxu1 }
 0x1d7   : > { %v511_v2 = vadd.f32 %v838_v34, %v510_v1  ;;  %v944_v3 = vpop.f32.mrb[10].mxu1  ;;  %969 = vmatprep.mubr.bf16.mxu0 %v559_v62 }
 0x1d8   : > { %v522_v4 = vadd.f32 %v944_v3, %v838_v34  ;;  %v513_v5 = vpop.f32.mrb[11].mxu1  ;;  %970 = vmatmul.mubr.bf16.gmra.mrb[20].mxu0 %v560_v61  ;;  %v551_v7 = vmax.f32 %v519_v0, 0.0 }
 0x1d9   : > { %v514_v6 = vadd.f32 %v838_v34, %v513_v5  ;;  %v549_v9 = vmax.f32 %v511_v2, 0.0 }
 0x1da   : > { %v552_v8 = vmax.f32 %v522_v4, 0.0 }
 0x1db   : > { %v550_v10 = vmax.f32 %v514_v6, 0.0 }
 0x1dc   : > { %v562_v11 = vpack.c.bf16 %v552_v8, %v551_v7 }
 0x1dd   : > { %v561_v12 = vpack.c.bf16 %v550_v10, %v549_v9  ;;  %v947_v13 = vpop.f32.mrb[12].mxu1 }
 0x1de   : > { %v535_v14 = vadd.f32 %v947_v13, %v838_v34  ;;  %v526_v15 = vpop.f32.mrb[13].mxu1 }
 0x1df   : > { %v527_v16 = vadd.f32 %v838_v34, %v526_v15  ;;  %v948_v17 = vpop.f32.mrb[14].mxu1  ;;  %973 = vmatprep.mubr.bf16.mxu0 %v561_v12 }
 0x1e0   : > { %v538_v18 = vadd.f32 %v948_v17, %v838_v34  ;;  %v529_v19 = vpop.f32.mrb[15].mxu1  ;;  %974 = vmatmul.mubr.bf16.gmra.mrb[24].mxu0 %v562_v11  ;;  %v555_v21 = vmax.f32 %v535_v14, 0.0 }
 0x1e1   : > { %v530_v20 = vadd.f32 %v838_v34, %v529_v19  ;;  %v553_v23 = vmax.f32 %v527_v16, 0.0 }
 0x1e2   : > { %v556_v22 = vmax.f32 %v538_v18, 0.0 }
 0x1e3   : > { %v554_v24 = vmax.f32 %v530_v20, 0.0 }
 0x1e4   : > { %v564_v25 = vpack.c.bf16 %v556_v22, %v555_v21 }
 0x1e5   : > { %v563_v26 = vpack.c.bf16 %v554_v24, %v553_v23 }
 0x1e7   : > { %977 = vmatprep.mubr.bf16.mxu0 %v563_v26 }
 0x1e8   : > { %978 = vmatmul.mubr.bf16.gmra.mrb[28].mxu0 %v564_v25 }
 0x2a3   : > { %v967_v28 = vpop.f32.mrb[16].mxu0 }
 0x2a4   : > { %v660_v29 = vadd.f32 %v967_v28, %v1168_v27  ;;  %v651_v30 = vpop.f32.mrb[17].mxu0 }
 0x2a5   : > { %v652_v31 = vadd.f32 %v1168_v27, %v651_v30  ;;  %v968_v32 = vpop.f32.mrb[18].mxu0 }
 0x2a6   : > { %1006 = vtanh.f32 %v660_v29  ;;  %v663_v33 = vadd.f32 %v968_v32, %v1168_v27  ;;  %v654_v34 = vpop.f32.mrb[19].mxu0 }
 0x2a7   : > { %1008 = vtanh.f32 %v652_v31  ;;  %v655_v35 = vadd.f32 %v1168_v27, %v654_v34 }
 0x2a8   : > { %1010 = vtanh.f32 %v663_v33 }
 0x2a9   : > { %1012 = vtanh.f32 %v655_v35 }
 0x2ab   : > { %v971_v36 = vpop.f32.mrb[20].mxu0 }
 0x2ac   : > { %v676_v37 = vadd.f32 %v971_v36, %v1168_v27  ;;  %v667_v38 = vpop.f32.mrb[21].mxu0 }
 0x2ad   : > { %v668_v39 = vadd.f32 %v1168_v27, %v667_v38  ;;  %v972_v40 = vpop.f32.mrb[22].mxu0 }
 0x2ae   : > { %1014 = vtanh.f32 %v676_v37  ;;  %v679_v41 = vadd.f32 %v972_v40, %v1168_v27  ;;  %v670_v42 = vpop.f32.mrb[23].mxu0 }
 0x2af   : > { %1016 = vtanh.f32 %v668_v39  ;;  %v671_v43 = vadd.f32 %v1168_v27, %v670_v42 }
 0x2b0   : > { %v1007_v44 = vpop.eup %1006  ;;  %1018 = vtanh.f32 %v679_v41 }
 0x2b1   : > { %v1009_v45 = vpop.eup %1008  ;;  %v732_v46 = vmul.f32 2.0, %v1007_v44  ;;  %1020 = vtanh.f32 %v671_v43 }
 0x2b2   : > { %v1011_v47 = vpop.eup %1010  ;;  %v730_v48 = vmul.f32 2.0, %v1009_v45 }
 0x2b3   : > { %v1013_v49 = vpop.eup %1012  ;;  %749 = vst.msk [vmem:[%s1183_s10 + $0x10] sm:$0xff] %vm746_vm1, %v732_v46  ;;  %v733_v50 = vmul.f32 2.0, %v1011_v47  ;;  %v975_v51 = vpop.f32.mrb[24].mxu0 }
 0x2b4   : > { %747 = vst.msk [vmem:[%s1183_s10] sm:$0xff] %vm746_vm1, %v730_v48  ;;  %v731_v52 = vmul.f32 2.0, %v1013_v49  ;;  %v692_v53 = vadd.f32 %v975_v51, %v1168_v27  ;;  %v683_v54 = vpop.f32.mrb[25].mxu0 }
 0x2b5   : > { %750 = vst.msk [vmem:[%s1183_s10 + $0x18] sm:$0xff] %vm746_vm1, %v733_v50  ;;  %v684_v55 = vadd.f32 %v1168_v27, %v683_v54  ;;  %v976_v56 = vpop.f32.mrb[26].mxu0 }
 0x2b6   : > { %748 = vst.msk [vmem:[%s1183_s10 + $0x8] sm:$0xff] %vm746_vm1, %v731_v52  ;;  %1022 = vtanh.f32 %v692_v53  ;;  %v695_v57 = vadd.f32 %v976_v56, %v1168_v27  ;;  %v686_v58 = vpop.f32.mrb[27].mxu0 }
 0x2b7   : > { %1024 = vtanh.f32 %v684_v55  ;;  %v687_v59 = vadd.f32 %v1168_v27, %v686_v58 }
 0x2b8   : > { %v1015_v60 = vpop.eup %1014  ;;  %1026 = vtanh.f32 %v695_v57 }
 0x2b9   : > { %v1017_v61 = vpop.eup %1016  ;;  %v736_v62 = vmul.f32 2.0, %v1015_v60  ;;  %1028 = vtanh.f32 %v687_v59 }
 0x2ba   : > { %v1019_v63 = vpop.eup %1018  ;;  %v734_v0 = vmul.f32 2.0, %v1017_v61 }
 0x2bb   : > { %v1021_v1 = vpop.eup %1020  ;;  %753 = vst.msk [vmem:[%s1183_s10 + $0x30] sm:$0xff] %vm746_vm1, %v736_v62  ;;  %v737_v2 = vmul.f32 2.0, %v1019_v63  ;;  %v979_v3 = vpop.f32.mrb[28].mxu0 }
 0x2bc   : > { %751 = vst.msk [vmem:[%s1183_s10 + $0x20] sm:$0xff] %vm746_vm1, %v734_v0  ;;  %v735_v4 = vmul.f32 2.0, %v1021_v1  ;;  %v708_v5 = vadd.f32 %v979_v3, %v1168_v27  ;;  %v699_v6 = vpop.f32.mrb[29].mxu0 }
 0x2bd   : > { %754 = vst.msk [vmem:[%s1183_s10 + $0x38] sm:$0xff] %vm746_vm1, %v737_v2  ;;  %v700_v7 = vadd.f32 %v1168_v27, %v699_v6  ;;  %v980_v8 = vpop.f32.mrb[30].mxu0 }
 0x2be   : > { %752 = vst.msk [vmem:[%s1183_s10 + $0x28] sm:$0xff] %vm746_vm1, %v735_v4  ;;  %1030 = vtanh.f32 %v708_v5  ;;  %v711_v9 = vadd.f32 %v980_v8, %v1168_v27  ;;  %v702_v10 = vpop.f32.mrb[31].mxu0 }
 0x2bf   : > { %1032 = vtanh.f32 %v700_v7  ;;  %v703_v11 = vadd.f32 %v1168_v27, %v702_v10 }
 0x2c0   : > { %v1023_v12 = vpop.eup %1022  ;;  %1034 = vtanh.f32 %v711_v9 }
 0x2c1   : > { %v1025_v13 = vpop.eup %1024  ;;  %v740_v14 = vmul.f32 2.0, %v1023_v12  ;;  %1036 = vtanh.f32 %v703_v11 }
 0x2c2   : > { %v1027_v15 = vpop.eup %1026  ;;  %v738_v16 = vmul.f32 2.0, %v1025_v13 }
 0x2c3   : > { %v1029_v17 = vpop.eup %1028  ;;  %757 = vst.msk [vmem:[%s1183_s10 + $0x50] sm:$0xff] %vm746_vm1, %v740_v14  ;;  %v741_v18 = vmul.f32 2.0, %v1027_v15 }
 0x2c4   : > { %755 = vst.msk [vmem:[%s1183_s10 + $0x40] sm:$0xff] %vm746_vm1, %v738_v16  ;;  %v739_v19 = vmul.f32 2.0, %v1029_v17 }
 0x2c5   : > { %758 = vst.msk [vmem:[%s1183_s10 + $0x58] sm:$0xff] %vm746_vm1, %v741_v18 }
 0x2c6   : > { %756 = vst.msk [vmem:[%s1183_s10 + $0x48] sm:$0xff] %vm746_vm1, %v739_v19 }
 0x2c8   : > { %v1031_v20 = vpop.eup %1030 }
 0x2c9   : > { %v1033_v21 = vpop.eup %1032  ;;  %v744_v22 = vmul.f32 2.0, %v1031_v20 }
 0x2ca   : > { %v1035_v23 = vpop.eup %1034  ;;  %v742_v24 = vmul.f32 2.0, %v1033_v21 }
 0x2cb   : > { %v1037_v25 = vpop.eup %1036  ;;  %761 = vst.msk [vmem:[%s1183_s10 + $0x70] sm:$0xff] %vm746_vm1, %v744_v22  ;;  %v745_v26 = vmul.f32 2.0, %v1035_v23 }
 0x2cc   : > { %759 = vst.msk [vmem:[%s1183_s10 + $0x60] sm:$0xff] %vm746_vm1, %v742_v24  ;;  %v743_v27 = vmul.f32 2.0, %v1037_v25 }
 0x2cd   : > { %762 = vst.msk [vmem:[%s1183_s10 + $0x78] sm:$0xff] %vm746_vm1, %v745_v26 }
 0x2ce   : > { %760 = vst.msk [vmem:[%s1183_s10 + $0x68] sm:$0xff] %vm746_vm1, %v743_v27 }
 0x2cf PF: > { %s13_s12 = sadd.s32 1, %s1044_s12  }
 0x2d0   : > { %p10_p4 = scmp.ge.s32.totalorder %s13_s12, 4  }
 0x2d2   :  { %12 = sbr.rel (!%p10_p4) target bundleno = 1 (0x1), region = 62 }

</bundles_post_ra>
